<compile_context>
chip_gen: v7x
topology: tpu7x:2x2x1
jax: 0.10.0
libtpu: 0.0.40
codegen_flags: <defaults>
</compile_context>

<pallas_src>
import math
from functools import partial

import jax
import jax.numpy as jnp
from jax import lax
from jax.experimental import pallas as pl
from jax.experimental.pallas import tpu as pltpu


def _attention_kernel(q_ref, k_ref, v_ref, o_ref, *, scale, group, lane_dense):
    # q_ref / k_ref / v_ref: (G, S, D) blocks -- G heads per grid step.
    q = q_ref[...] * scale          # fold 1/sqrt(k_dim) into q: S*D mults, not S*S
    k = k_ref[...]
    v = v_ref[...]

    # scores[g, i, j] = sum_d q[g, i, d] * k[g, j, d]
    # Contract over D directly (batched over G) -- no explicit k.T, no XLU transpose.
    scores = lax.dot_general(
        q, k,
        dimension_numbers=(((2,), (2,)), ((0,), (0,))),
        preferred_element_type=jnp.float32,
    )  # (G, S, S) f32

    # Numerically-stable softmax over the last axis.
    m = jnp.max(scores, axis=-1, keepdims=True)
    p = jnp.exp(scores - m)
    denom = jnp.sum(p, axis=-1, keepdims=True)
    p = p * pl.reciprocal(denom, approx=True)   # EUP vrcp; VALU slot stays free

    # out[g, i, d] = sum_j p[g, i, j] * v[g, j, d]
    out = lax.dot_general(
        p.astype(v.dtype), v,
        dimension_numbers=(((2,), (1,)), ((0,), (0,))),
        preferred_element_type=jnp.float32,
    )  # (G, S, D) f32

    if lane_dense:
        # Fold the G heads into the last (lane) dim so the store is lane-dense:
        # with D < 128 a (G, S, D) write would be masked partial stores.
        slab = jnp.concatenate([out[g] for g in range(group)], axis=-1)  # (S, G*D)
        o_ref[0] = slab.astype(o_ref.dtype)
    else:
        o_ref[...] = out.astype(o_ref.dtype)


def _per_step_vmem_bytes(g, s, d, itemsize):
    io = 2 * 3 * g * s * d * itemsize      # double-buffered q, k, v input blocks
    out = 2 * g * s * d * itemsize         # double-buffered output block
    tmp = 3 * g * s * s * 4                # scores / exp / weights temporaries (f32)
    return io + out + tmp


def _choose_group(bh, s, d, itemsize, budget=24 * 1024 * 1024, cap=16):
    """Largest divisor of BH (<= cap) whose per-step working set fits the budget."""
    best = 1
    for g in range(1, min(bh, cap) + 1):
        if bh % g == 0 and _per_step_vmem_bytes(g, s, d, itemsize) <= budget:
            best = g
    return best


def scaled_dot_product_attention(q, k, v, k_dim=None):
    """q, k, v: (B, H, S, D). Returns softmax(q @ k^T / sqrt(k_dim)) @ v, shape (B, H, S, D)."""
    B, H, S, D = q.shape
    if k_dim is None:
        k_dim = D
    scale = 1.0 / math.sqrt(k_dim)
    BH = B * H

    qf = q.reshape(BH, S, D)
    kf = k.reshape(BH, S, D)
    vf = v.reshape(BH, S, D)

    itemsize = jnp.dtype(q.dtype).itemsize
    G = _choose_group(BH, S, D, itemsize)
    lane_dense = (D % 128 != 0) and G > 1

    grid = (BH // G,)
    in_spec = pl.BlockSpec((G, S, D), lambda i: (i, 0, 0))

    if lane_dense:
        out_shape = jax.ShapeDtypeStruct((BH // G, S, G * D), q.dtype)
        out_spec = pl.BlockSpec((1, S, G * D), lambda i: (i, 0, 0))
    else:
        out_shape = jax.ShapeDtypeStruct((BH, S, D), q.dtype)
        out_spec = pl.BlockSpec((G, S, D), lambda i: (i, 0, 0))

    # Only raise the scoped-VMEM limit when the working set actually needs it
    # (default scoped limit is 16/32 MiB depending on generation).
    params = dict(dimension_semantics=("parallel",))
    needed = _per_step_vmem_bytes(G, S, D, itemsize)
    if needed > 16 * 1024 * 1024:
        params["vmem_limit_bytes"] = int(
            min(max(2 * needed, 32 * 1024 * 1024), 96 * 1024 * 1024)
        )

    kernel = partial(_attention_kernel, scale=scale, group=G, lane_dense=lane_dense)

    out = pl.pallas_call(
        kernel,
        out_shape=out_shape,
        grid_spec=pltpu.PrefetchScalarGridSpec(
            num_scalar_prefetch=0,
            grid=grid,
            in_specs=[in_spec, in_spec, in_spec],
            out_specs=out_spec,
        ),
        compiler_params=pltpu.CompilerParams(**params),
    )(qf, kf, vf)

    if lane_dense:
        # un-plumb the lane-dense slab: (BH/G, S, G*D) -> (BH/G, G, S, D) -> (B, H, S, D)
        out = out.reshape(BH // G, S, G, D).transpose(0, 2, 1, 3)
    return out.reshape(B, H, S, D)


def _reference(q, k, v, k_dim):
    scores = jnp.einsum("bhqd,bhkd->bhqk", q, k) / math.sqrt(k_dim)
    p = jax.nn.softmax(scores, axis=-1)
    return jnp.einsum("bhqk,bhkd->bhqd", p, v)


if __name__ == "__main__":
    # small shapes implied by the forward: (batch, heads, seq, k_dim)
    B, H, S, D = 2, 4, 8, 32
    key = jax.random.PRNGKey(0)
    kq, kk, kv = jax.random.split(key, 3)
    q = jax.random.normal(kq, (B, H, S, D), dtype=jnp.float32)
    k = jax.random.normal(kk, (B, H, S, D), dtype=jnp.float32)
    v = jax.random.normal(kv, (B, H, S, D), dtype=jnp.float32)

    out = scaled_dot_product_attention(q, k, v, k_dim=D)
    out = jax.block_until_ready(out)

    ref = _reference(q, k, v, D)
    assert out.shape == (B, H, S, D)
    # approx reciprocal (EUP) in the softmax denominator -> slightly looser tolerance
    assert jnp.allclose(out, ref, atol=5e-3, rtol=5e-3), "mismatch vs reference"
    print("KERNEL_OK")
</pallas_src>

<mosaic_0001>
module attributes {stable_mosaic.version = 11 : i64} {
  func.func @_attention_kernel(%arg0: i32, %arg1: memref<8x8x32xf32, #tpu.memory_space<vmem>>, %arg2: memref<8x8x32xf32, #tpu.memory_space<vmem>>, %arg3: memref<8x8x32xf32, #tpu.memory_space<vmem>>, %arg4: memref<1x8x256xf32, #tpu.memory_space<vmem>>) attributes {dimension_semantics = [#tpu.dimension_semantics<parallel>], iteration_bounds = array<i64: 1>, scalar_prefetch = 0 : i64, scratch_operands = 0 : i64, tpu.core_type = #tpu.core_type<tc>, window_params = [{transform_indices = @transform_0, window_bounds = array<i64: 8, 8, 32>}, {transform_indices = @transform_1, window_bounds = array<i64: 8, 8, 32>}, {transform_indices = @transform_2, window_bounds = array<i64: 8, 8, 32>}, {transform_indices = @transform_3, window_bounds = array<i64: 1, 8, 256>}]} {
    %c0 = arith.constant 0 : index
    %c0_0 = arith.constant 0 : index
    %c0_1 = arith.constant 0 : index
    %0 = vector.load %arg1[%c0, %c0_0, %c0_1] : memref<8x8x32xf32, #tpu.memory_space<vmem>>, vector<8x8x32xf32>
    %cst = arith.constant 0.176776692 : f32
    %1 = vector.broadcast %cst : f32 to vector<8x8x32xf32>
    %2 = arith.mulf %0, %1 : vector<8x8x32xf32>
    %c0_2 = arith.constant 0 : index
    %c0_3 = arith.constant 0 : index
    %c0_4 = arith.constant 0 : index
    %3 = vector.load %arg2[%c0_2, %c0_3, %c0_4] : memref<8x8x32xf32, #tpu.memory_space<vmem>>, vector<8x8x32xf32>
    %c0_5 = arith.constant 0 : index
    %c0_6 = arith.constant 0 : index
    %c0_7 = arith.constant 0 : index
    %4 = vector.load %arg3[%c0_5, %c0_6, %c0_7] : memref<8x8x32xf32, #tpu.memory_space<vmem>>, vector<8x8x32xf32>
    %cst_8 = arith.constant dense<0.000000e+00> : vector<8x8x8xf32>
    %5 = tpu.matmul %2, %3, %cst_8 {dimension_numbers = #tpu.dot_dimension_numbers<[2], [2], [1], [1], [0, 0, 0, 1, 1, 1], [0], [0]>} : vector<8x8x32xf32>, vector<8x8x32xf32>, vector<8x8x8xf32> -> vector<8x8x8xf32>
    %cst_9 = arith.constant dense<0xFF800000> : vector<8x8xf32>
    %6 = vector.multi_reduction <maximumf>, %5, %cst_9 [2] : vector<8x8x8xf32> to vector<8x8xf32>
    %7 = vector.shape_cast %6 : vector<8x8xf32> to vector<8x8x1xf32>
    %8 = vector.broadcast %7 : vector<8x8x1xf32> to vector<8x8x8xf32>
    %9 = arith.subf %5, %8 : vector<8x8x8xf32>
    %10 = math.exp %9 : vector<8x8x8xf32>
    %cst_10 = arith.constant dense<0.000000e+00> : vector<8x8xf32>
    %11 = vector.multi_reduction <add>, %10, %cst_10 [2] : vector<8x8x8xf32> to vector<8x8xf32>
    %12 = vector.shape_cast %11 : vector<8x8xf32> to vector<8x8x1xf32>
    %13 = tpu.reciprocal %12 {approx = true} : vector<8x8x1xf32> -> vector<8x8x1xf32>
    %14 = vector.broadcast %13 : vector<8x8x1xf32> to vector<8x8x8xf32>
    %15 = arith.mulf %10, %14 : vector<8x8x8xf32>
    %cst_11 = arith.constant dense<0.000000e+00> : vector<8x8x32xf32>
    %16 = tpu.matmul %15, %4, %cst_11 {dimension_numbers = #tpu.dot_dimension_numbers<[2], [1], [1], [2], [0, 0, 0, 1, 1, 2], [0], [0]>} : vector<8x8x8xf32>, vector<8x8x32xf32>, vector<8x8x32xf32> -> vector<8x8x32xf32>
    %17 = vector.extract_strided_slice %16 {offsets = [0, 0, 0], sizes = [1, 8, 32], strides = [1, 1, 1]} : vector<8x8x32xf32> to vector<1x8x32xf32>
    %18 = vector.shape_cast %17 : vector<1x8x32xf32> to vector<8x32xf32>
    %19 = vector.extract_strided_slice %16 {offsets = [1, 0, 0], sizes = [1, 8, 32], strides = [1, 1, 1]} : vector<8x8x32xf32> to vector<1x8x32xf32>
    %20 = vector.shape_cast %19 : vector<1x8x32xf32> to vector<8x32xf32>
    %21 = vector.extract_strided_slice %16 {offsets = [2, 0, 0], sizes = [1, 8, 32], strides = [1, 1, 1]} : vector<8x8x32xf32> to vector<1x8x32xf32>
    %22 = vector.shape_cast %21 : vector<1x8x32xf32> to vector<8x32xf32>
    %23 = vector.extract_strided_slice %16 {offsets = [3, 0, 0], sizes = [1, 8, 32], strides = [1, 1, 1]} : vector<8x8x32xf32> to vector<1x8x32xf32>
    %24 = vector.shape_cast %23 : vector<1x8x32xf32> to vector<8x32xf32>
    %25 = vector.extract_strided_slice %16 {offsets = [4, 0, 0], sizes = [1, 8, 32], strides = [1, 1, 1]} : vector<8x8x32xf32> to vector<1x8x32xf32>
    %26 = vector.shape_cast %25 : vector<1x8x32xf32> to vector<8x32xf32>
    %27 = vector.extract_strided_slice %16 {offsets = [5, 0, 0], sizes = [1, 8, 32], strides = [1, 1, 1]} : vector<8x8x32xf32> to vector<1x8x32xf32>
    %28 = vector.shape_cast %27 : vector<1x8x32xf32> to vector<8x32xf32>
    %29 = vector.extract_strided_slice %16 {offsets = [6, 0, 0], sizes = [1, 8, 32], strides = [1, 1, 1]} : vector<8x8x32xf32> to vector<1x8x32xf32>
    %30 = vector.shape_cast %29 : vector<1x8x32xf32> to vector<8x32xf32>
    %31 = vector.extract_strided_slice %16 {offsets = [7, 0, 0], sizes = [1, 8, 32], strides = [1, 1, 1]} : vector<8x8x32xf32> to vector<1x8x32xf32>
    %32 = vector.shape_cast %31 : vector<1x8x32xf32> to vector<8x32xf32>
    %33 = tpu.concatenate %18, %20, %22, %24, %26, %28, %30, %32 in 1 : vector<8x32xf32>, vector<8x32xf32>, vector<8x32xf32>, vector<8x32xf32>, vector<8x32xf32>, vector<8x32xf32>, vector<8x32xf32>, vector<8x32xf32> -> vector<8x256xf32>
    %c0_12 = arith.constant 0 : index
    %c0_13 = arith.constant 0 : index
    %c0_14 = arith.constant 0 : index
    %34 = vector.load %arg4[%c0_12, %c0_13, %c0_14] : memref<1x8x256xf32, #tpu.memory_space<vmem>>, vector<1x8x256xf32>
    %35 = vector.shape_cast %34 : vector<1x8x256xf32> to vector<8x256xf32>
    %36 = vector.shape_cast %33 : vector<8x256xf32> to vector<1x8x256xf32>
    tpu.vector_store %arg4[%c0_12, %c0_13, %c0_14], %36 {strides = array<i32>} : memref<1x8x256xf32, #tpu.memory_space<vmem>>, vector<1x8x256xf32>,
    return
  }
  func.func @transform_0(%arg0: i32) -> (i32, i32, i32) {
    %c0_i32 = arith.constant 0 : i32
    %c0_i32_0 = arith.constant 0 : i32
    %c0_i32_1 = arith.constant 0 : i32
    return %arg0, %c0_i32, %c0_i32_0 : i32, i32, i32
  }
  func.func @transform_1(%arg0: i32) -> (i32, i32, i32) {
    %c0_i32 = arith.constant 0 : i32
    %c0_i32_0 = arith.constant 0 : i32
    %c0_i32_1 = arith.constant 0 : i32
    return %arg0, %c0_i32, %c0_i32_0 : i32, i32, i32
  }
  func.func @transform_2(%arg0: i32) -> (i32, i32, i32) {
    %c0_i32 = arith.constant 0 : i32
    %c0_i32_0 = arith.constant 0 : i32
    %c0_i32_1 = arith.constant 0 : i32
    return %arg0, %c0_i32, %c0_i32_0 : i32, i32, i32
  }
  func.func @transform_3(%arg0: i32) -> (i32, i32, i32) {
    %c0_i32 = arith.constant 0 : i32
    %c0_i32_0 = arith.constant 0 : i32
    %c0_i32_1 = arith.constant 0 : i32
    return %arg0, %c0_i32, %c0_i32_0 : i32, i32, i32
  }
}

</mosaic_0001>

<bundles_post_ra>
// kernel: tpu_custom_call.1
= control target key start
LH: loop header
LB: loop body
LE: loop exit
PB: predicated region body
PF: predicated region fallthrough
CT: control target
= control target key end

     0   :  { %8 = vsyncpa [#allocation3], 0  ;;  %s1890_s0 = inlined_call_operand.hbm [shape: f32[8,8,32], index: 0, kind: input, shape index: {}]   ;;  %s1891_s1 = inlined_call_operand.hbm [shape: f32[8,8,32], index: 1, kind: input, shape index: {}]   ;;  %s1892_s2 = inlined_call_operand.hbm [shape: f32[8,8,32], index: 2, kind: input, shape index: {}]   ;;  %s1893_s3 = inlined_call_operand.hbm [shape: f32[1,8,256], index: 3, kind: output, shape index: {}]  }
   0x1   :  { %9 = vsyncpa [#allocation6], 0 }
   0x2   :  { %10 = vsyncpa [#allocation4], 0  ;;  %s1693_s12 = smov [#allocation5]   ;;  %s1694_s14 = smov [#allocation2]  }
   0x3   :  { %s28_s13 = sshll.u32 %s1693_s12, 4  ;;  %s16_s15 = sshll.u32 %s1694_s14, 4  ;;  %s29_s13 = int_to_ptr.vmem [resolvable:$true] %s28_s13  ;;  %s1724_s15 = int_to_ptr.vmem [resolvable:$true] %s16_s15 }
   0x4   :  { %s1599_s18 = scalar_lea.hbm %s1891_s1, 1024 }
   0x5   :  { %p1600_p0 = scmp.ne.s32.totalorder %s1891_s1, %s1599_s18  ;;  %p1603_p1 = scmp.lt.u32.totalorder %s1599_s18, %s1891_s1 }
   0x7   :  { %p1605_p2 = pnand %p1603_p1, %p1600_p0 }
   0x9   :  { %1608 = shalt.err (!%p1605_p2)
}
   0xa   :  { %s1609_s23 = scalar_lea.vmem %s29_s13, 1024  ;;  %p1614_p4 = scmp.lt.s32.totalorder %s29_s13, %s29_s13 }
   0xb   :  { %p1610_p3 = scmp.ne.s32.totalorder %s29_s13, %s1609_s23  ;;  %p1615_p5 = scmp.lt.s32.totalorder %s1609_s23, %s1609_s23 }
   0xd   :  { %p1616_p6 = por %p1615_p5, %p1614_p4 }
   0xf   :  { %p1617_p7 = pnand %p1616_p6, %p1610_p3 }
  0x11   :  { %1620 = shalt.err (!%p1617_p7)
}
  0x12   :  { %s1695_s24 = smov 128   ;;  %s1696_s25 = smov 8  }
  0x13   :  { %34 = dma.hbm_to_vmem [thread:$0]  %s1891_s1, 1024, %s29_s13, [#allocation6], %s1695_s24, %s1695_s24, %s1696_s25  }
  0x14   :  { %s1621_s30 = scalar_lea.hbm %s1890_s0, 1024 }
  0x15   :  { %p1622_p8 = scmp.ne.s32.totalorder %s1890_s0, %s1621_s30  ;;  %p1625_p9 = scmp.lt.u32.totalorder %s1621_s30, %s1890_s0 }
  0x17   :  { %p1627_p10 = pnand %p1625_p9, %p1622_p8 }
  0x19   :  { %1630 = shalt.err (!%p1627_p10)
}
  0x1a   :  { %s1631_s8 = scalar_lea.vmem %s1724_s15, 1024  ;;  %p1636_p12 = scmp.lt.s32.totalorder %s1724_s15, %s1724_s15 }
  0x1b   :  { %p1632_p11 = scmp.ne.s32.totalorder %s1724_s15, %s1631_s8  ;;  %p1637_p13 = scmp.lt.s32.totalorder %s1631_s8, %s1631_s8 }
  0x1d   :  { %p1638_p0 = por %p1637_p13, %p1636_p12 }
  0x1f   :  { %p1639_p1 = pnand %p1638_p0, %p1632_p11 }
  0x21   :  { %1642 = shalt.err (!%p1639_p1)
}
  0x22   :  { %22 = dma.hbm_to_vmem [thread:$0]  %s1890_s0, 1024, %s1724_s15, [#allocation3], %s1695_s24, %s1695_s24, %s1696_s25  }
  0x23   :  { %s1697_s10 = smov [#allocation7]   ;;  %s1643_s14 = scalar_lea.hbm %s1892_s2, 1024 }
  0x24   :  { %s40_s11 = sshll.u32 %s1697_s10, 4  ;;  %p1644_p2 = scmp.ne.s32.totalorder %s1892_s2, %s1643_s14  ;;  %s41_s11 = int_to_ptr.vmem [resolvable:$true] %s40_s11 }
  0x25   :  { %p1647_p3 = scmp.lt.u32.totalorder %s1643_s14, %s1892_s2 }
  0x27   :  { %p1649_p4 = pnand %p1647_p3, %p1644_p2 }
  0x29   :  { %1652 = shalt.err (!%p1649_p4)
}
  0x2a   :  { %s1653_s20 = scalar_lea.vmem %s41_s11, 1024  ;;  %p1658_p6 = scmp.lt.s32.totalorder %s41_s11, %s41_s11 }
  0x2b   :  { %p1654_p5 = scmp.ne.s32.totalorder %s41_s11, %s1653_s20  ;;  %p1659_p7 = scmp.lt.s32.totalorder %s1653_s20, %s1653_s20 }
  0x2d   :  { %p1660_p8 = por %p1659_p7, %p1658_p6 }
  0x2f   :  { %p1661_p9 = pnand %p1660_p8, %p1654_p5 }
  0x31   :  { %1664 = shalt.err (!%p1661_p9)
}
  0x32   :  { %46 = dma.hbm_to_vmem [thread:$0]  %s1892_s2, 1024, %s41_s11, [#allocation6], %s1695_s24, %s1695_s24, %s1696_s25  }
  0x33   :  { %1687 = dma.done.wait [#allocation3], 1024  }
  0x34   :  { %1688 = vsyncadd [#allocation3], 4294966272 }
  0x35   :  { %1689 = dma.done.wait [#allocation6], 2048  }
  0x36   :  { %1690 = vsyncadd [#allocation6], 4294965248  ;;  %v1698_v0 = vmov 0.0   ;;  %vm1699_vm0 = vmmov 0   ;;  %vm88_vm1 = vcmask 261120   ;;  %v72_v1 = vld [vmem:[#allocation5] sm:$0xff] }
  0x37   :  { %1476 = vmatprep.subr.mxu0 %v1698_v0  ;;  %1478 = vmatprep.mubr.msk.f32.mxu0 %vm1699_vm0, %v1698_v0  ;;  %v56_v2 = vld [vmem:[#allocation2] sm:$0xff]  ;;  %v73_v3 = vld [vmem:[#allocation5 + $0x8] sm:$0xff]  ;;  %v58_v6 = vld [vmem:[#allocation2 + $0x10] sm:$0xff]  ;;  %vm697_vm2 = vcmask 64512   ;;  %s1700_s2 = smov 32   ;;  %s1701_s21 = smov 64  }
  0x38   :  { %1481 = vmatprep.subr.mxu1 %v1698_v0  ;;  %1483 = vmatprep.mubr.msk.f32.mxu1 %vm1699_vm0, %v1698_v0  ;;  %v64_v4 = vmul.f32 0.17677669, %v56_v2  ;;  %v57_v5 = vld [vmem:[#allocation2 + $0x8] sm:$0xff]  ;;  %v74_v7 = vld [vmem:[#allocation5 + $0x10] sm:$0xff]  ;;  %v75_v9 = vld [vmem:[#allocation5 + $0x18] sm:$0xff]  ;;  %s1702_s22 = smov 96  }
  0x39   :  { %1477 = vmatpush3.xpose.msk.msra.mxu0 %vm88_vm1, %v72_v1  ;;  %1482 = vmatpush3.xpose.msk.msra.mxu1 %vm88_vm1, %v73_v3  ;;  %v65_v8 = vmul.f32 0.17677669, %v57_v5  ;;  %v59_v10 = vld [vmem:[#allocation2 + $0x18] sm:$0xff]  ;;  %v66_v11 = vmul.f32 0.17677669, %v58_v6  ;;  %v60_v12 = vld [vmem:[#allocation2 + $0x20] sm:$0xff] }
  0x3a   :  { %1486 = vmatprep.subr.mxu0 %v1698_v0  ;;  %1491 = vmatprep.subr.mxu1 %v1698_v0  ;;  %v76_v13 = vld [vmem:[#allocation5 + $0x20] sm:$0xff]  ;;  %v67_v14 = vmul.f32 0.17677669, %v59_v10  ;;  %v61_v15 = vld [vmem:[#allocation2 + $0x28] sm:$0xff]  ;;  %v68_v16 = vmul.f32 0.17677669, %v60_v12 }
  0x3b   :  { %v77_v17 = vld [vmem:[#allocation5 + $0x28] sm:$0xff]  ;;  %v62_v18 = vld [vmem:[#allocation2 + $0x30] sm:$0xff]  ;;  %v69_v20 = vmul.f32 0.17677669, %v61_v15  ;;  %v63_v21 = vld [vmem:[#allocation2 + $0x38] sm:$0xff]  ;;  %vm1395_vm3 = vcmask 523264  }
  0x3c   :  { %1479 = vmatmul.mubr.msk.f32.vlgmr.msra.gmra.mrb[0].mxu0 %vm88_vm1, %v64_v4  ;;  %1484 = vmatmul.mubr.msk.f32.vlgmr.msra.gmra.mrb[0].mxu1 %vm88_vm1, %v65_v8  ;;  %v78_v19 = vld [vmem:[#allocation5 + $0x30] sm:$0xff]  ;;  %v70_v22 = vmul.f32 0.17677669, %v62_v18  ;;  %v79_v23 = vld [vmem:[#allocation5 + $0x38] sm:$0xff]  ;;  %v71_v24 = vmul.f32 0.17677669, %v63_v21 }
  0x3d   :  { %1487 = vmatpush3.xpose.msk.msra.mxu0 %vm88_vm1, %v74_v7  ;;  %1488 = vmatprep.mubr.msk.f32.mxu0 %vm1699_vm0, %v1698_v0  ;;  %vm1397_vm4 = vcmask 785408   ;;  %s1703_s23 = smov [#allocation8]  }
  0x3e   :  { %1496 = vmatprep.subr.mxu0 %v1698_v0  ;;  %1492 = vmatpush3.xpose.msk.msra.mxu1 %vm88_vm1, %v75_v9  ;;  %s1410_s24 = sshll.u32 %s1703_s23, 4  ;;  %s1411_s24 = int_to_ptr.vmem [resolvable:$true] %s1410_s24 }
  0x3f   :  { %1493 = vmatprep.mubr.msk.f32.mxu1 %vm1699_vm0, %v1698_v0  ;;  %1501 = vmatprep.subr.mxu1 %v1698_v0  ;;  %s1665_s25 = scalar_lea.vmem %s1411_s24, 256  ;;  %p1670_p11 = scmp.lt.s32.totalorder %s1411_s24, %s1411_s24 }
  0x40   :  { %1489 = vmatmul.mubr.msk.f32.vlgmr.msra.gmra.mrb[2].mxu0 %vm88_vm1, %v66_v11  ;;  %p1666_p10 = scmp.ne.s32.totalorder %s1411_s24, %s1665_s25  ;;  %p1671_p12 = scmp.lt.s32.totalorder %s1665_s25, %s1665_s25 }
  0x41   :  { %1497 = vmatpush3.xpose.msk.msra.mxu0 %vm88_vm1, %v76_v13  ;;  %1498 = vmatprep.mubr.msk.f32.mxu0 %vm1699_vm0, %v1698_v0 }
  0x42   :  { %1494 = vmatmul.mubr.msk.f32.vlgmr.msra.gmra.mrb[2].mxu1 %vm88_vm1, %v67_v14  ;;  %1506 = vmatprep.subr.mxu0 %v1698_v0  ;;  %p1672_p13 = por %p1671_p12, %p1670_p11 }
  0x43   :  { %1502 = vmatpush3.xpose.msk.msra.mxu1 %vm88_vm1, %v77_v17  ;;  %1503 = vmatprep.mubr.msk.f32.mxu1 %vm1699_vm0, %v1698_v0 }
  0x44   :  { %1499 = vmatmul.mubr.msk.f32.vlgmr.msra.gmra.mrb[4].mxu0 %vm88_vm1, %v68_v16  ;;  %1511 = vmatprep.subr.mxu1 %v1698_v0  ;;  %p1673_p0 = pnand %p1672_p13, %p1666_p10 }
  0x45   :  { %1507 = vmatpush3.xpose.msk.msra.mxu0 %vm88_vm1, %v78_v19  ;;  %1508 = vmatprep.mubr.msk.f32.mxu0 %vm1699_vm0, %v1698_v0 }
  0x46   :  { %1504 = vmatmul.mubr.msk.f32.vlgmr.msra.gmra.mrb[4].mxu1 %vm88_vm1, %v69_v20  ;;  %1516 = vmatprep.subr.mxu0 %v1698_v0 }
  0x47   :  { %1512 = vmatpush3.xpose.msk.msra.mxu1 %vm88_vm1, %v79_v23  ;;  %1513 = vmatprep.mubr.msk.f32.mxu1 %vm1699_vm0, %v1698_v0 }
  0x48   :  { %1509 = vmatmul.mubr.msk.f32.vlgmr.msra.gmra.mrb[6].mxu0 %vm88_vm1, %v70_v22  ;;  %1521 = vmatprep.subr.mxu1 %v1698_v0 }
  0x49   :  { %1518 = vmatprep.mubr.msk.f32.mxu0 %vm1699_vm0, %v1698_v0 }
  0x4a   :  { %1514 = vmatmul.mubr.msk.f32.vlgmr.msra.gmra.mrb[6].mxu1 %vm88_vm1, %v71_v24 }
  0x4b   :  { %1523 = vmatprep.mubr.msk.f32.mxu1 %vm1699_vm0, %v1698_v0 }
 0x10f   :  { %v161_v25 = vpop.f32.mrb[0].mxu0  ;;  %v237_v26 = vpop.f32.mrb[0].mxu1 }
 0x110   :  { %v1480_v27 = vpop.f32.mrb[1].mxu0  ;;  %v698_v28 = vsel %vm697_vm2, %v161_v25, -inf  ;;  %v1485_v29 = vpop.f32.mrb[1].mxu1  ;;  %v701_v30 = vsel %vm697_vm2, %v237_v26, -inf }
 0x111   :  { %699 = vmax.xlane.f32.xlu0 %v698_v28  ;;  %v81_v27 = vld [vmem:[#allocation7 + $0x8] sm:$0xff] }
 0x112   :  { %1522 = vmatpush3.msra.mxu1 %v81_v27 }
 0x113   :  { %v313_v31 = vpop.f32.mrb[2].mxu0  ;;  %1531 = vmatprep.subr.mxu1 %v1698_v0 }
 0x114   :  { %v1490_v32 = vpop.f32.mrb[3].mxu0  ;;  %v704_v33 = vsel %vm697_vm2, %v313_v31, -inf }
 0x115   :  { %702 = vmax.xlane.f32.xlu0 %v701_v30  ;;  %705 = vmax.xlane.f32.xlu1 %v704_v33  ;;  %v389_v34 = vpop.f32.mrb[2].mxu1 }
 0x116   :  { %v1495_v35 = vpop.f32.mrb[3].mxu1  ;;  %v707_v36 = vsel %vm697_vm2, %v389_v34, -inf }
 0x117   :  { %v465_v37 = vpop.f32.mrb[4].mxu0 }
 0x118   :  { %v710_v38 = vsel %vm697_vm2, %v465_v37, -inf  ;;  %v1500_v39 = vpop.f32.mrb[5].mxu0 }
 0x119   :  { %708 = vmax.xlane.f32.xlu1 %v707_v36  ;;  %711 = vmax.xlane.f32.xlu0 %v710_v38  ;;  %v541_v40 = vpop.f32.mrb[4].mxu1  ;;  %v82_v36 = vld [vmem:[#allocation7 + $0x10] sm:$0xff] }
 0x11a   :  { %v1505_v41 = vpop.f32.mrb[5].mxu1  ;;  %v713_v42 = vsel %vm697_vm2, %v541_v40, -inf }
 0x11b   :  { %v617_v43 = vpop.f32.mrb[6].mxu0 }
 0x11c   :  { %v716_v44 = vsel %vm697_vm2, %v617_v43, -inf  ;;  %v1510_v45 = vpop.f32.mrb[7].mxu0 }
 0x11d   :  { %714 = vmax.xlane.f32.xlu1 %v713_v42  ;;  %717 = vmax.xlane.f32.xlu0 %v716_v44  ;;  %v693_v46 = vpop.f32.mrb[6].mxu1  ;;  %v83_v42 = vld [vmem:[#allocation7 + $0x18] sm:$0xff]  ;;  %v84_v44 = vld [vmem:[#allocation7 + $0x20] sm:$0xff] }
 0x11e   :  { %v719_v47 = vsel %vm697_vm2, %v693_v46, -inf  ;;  %v1515_v48 = vpop.f32.mrb[7].mxu1 }
 0x11f   :  { %v85_v48 = vld [vmem:[#allocation7 + $0x28] sm:$0xff] }
 0x121   :  { %720 = vmax.xlane.f32.xlu1 %v719_v47 }
 0x19e   :  { %v700_v49 = vpop.xlane.xlu0 %699 }
 0x19f   :  { %v722_v50 = vsub.f32 %v161_v25, %v700_v49 }
 0x1a1   :  { %v730_v51 = vmul.f32 1.442695, %v722_v50  ;;  %v86_v50 = vld [vmem:[#allocation7 + $0x30] sm:$0xff] }
 0x1a2   :  { %v703_v52 = vpop.xlane.xlu0 %702  ;;  %v706_v53 = vpop.xlane.xlu1 %705 }
 0x1a3   :  { %1567 = vpow2.f32 %v730_v51  ;;  %v723_v54 = vsub.f32 %v237_v26, %v703_v52  ;;  %v724_v55 = vsub.f32 %v313_v31, %v706_v53  ;;  %v80_v26 = vld [vmem:[#allocation7] sm:$0xff] }
 0x1a4   :  { %1517 = vmatpush3.msra.mxu0 %v80_v26 }
 0x1a5   :  { %v732_v56 = vmul.f32 1.442695, %v723_v54  ;;  %v734_v57 = vmul.f32 1.442695, %v724_v55  ;;  %1526 = vmatprep.subr.mxu0 %v1698_v0  ;;  %v87_v54 = vld [vmem:[#allocation7 + $0x38] sm:$0xff] }
 0x1a6   :  { %v709_v58 = vpop.xlane.xlu1 %708  ;;  %v712_v59 = vpop.xlane.xlu0 %711 }
 0x1a7   :  { %1569 = vpow2.f32 %v732_v56  ;;  %v725_v60 = vsub.f32 %v389_v34, %v709_v58  ;;  %v726_v61 = vsub.f32 %v465_v37, %v712_v59 }
 0x1a8   :  { %1571 = vpow2.f32 %v734_v57 }
 0x1a9   :  { %v736_v62 = vmul.f32 1.442695, %v725_v60  ;;  %v738_v63 = vmul.f32 1.442695, %v726_v61 }
 0x1aa   :  { %v715_v1 = vpop.xlane.xlu1 %714  ;;  %v718_v2 = vpop.xlane.xlu0 %717 }
 0x1ab   :  { %1573 = vpow2.f32 %v736_v62  ;;  %v727_v3 = vsub.f32 %v541_v40, %v715_v1  ;;  %v728_v4 = vsub.f32 %v617_v43, %v718_v2 }
 0x1ac   :  { %1575 = vpow2.f32 %v738_v63 }
 0x1ad   :  { %v1568_v5 = vpop.eup %1567  ;;  %v740_v6 = vmul.f32 1.442695, %v727_v3  ;;  %v742_v7 = vmul.f32 1.442695, %v728_v4 }
 0x1ae   :  { %v721_v8 = vpop.xlane.xlu1 %720  ;;  %v746_v9 = vsel %vm697_vm2, %v1568_v5, 0.0 }
 0x1af   :  { %1577 = vpow2.f32 %v740_v6  ;;  %v729_v10 = vsub.f32 %v693_v46, %v721_v8  ;;  %747 = vadd.xlane.f32.xlu0 %v746_v9 }
 0x1b0   :  { %1579 = vpow2.f32 %v742_v7 }
 0x1b1   :  { %v1570_v11 = vpop.eup %1569  ;;  %v744_v12 = vmul.f32 1.442695, %v729_v10 }
 0x1b2   :  { %v1572_v13 = vpop.eup %1571  ;;  %v749_v14 = vsel %vm697_vm2, %v1570_v11, 0.0 }
 0x1b3   :  { %1581 = vpow2.f32 %v744_v12  ;;  %750 = vadd.xlane.f32.xlu1 %v749_v14  ;;  %v752_v15 = vsel %vm697_vm2, %v1572_v13, 0.0 }
 0x1b4   :  { %753 = vadd.xlane.f32.xlu0 %v752_v15 }
 0x1b5   :  { %v1574_v16 = vpop.eup %1573 }
 0x1b6   :  { %v1576_v17 = vpop.eup %1575  ;;  %v755_v18 = vsel %vm697_vm2, %v1574_v16, 0.0 }
 0x1b7   :  { %756 = vadd.xlane.f32.xlu1 %v755_v18  ;;  %v758_v19 = vsel %vm697_vm2, %v1576_v17, 0.0 }
 0x1b8   :  { %759 = vadd.xlane.f32.xlu0 %v758_v19 }
 0x1b9   :  { %v1835_v20 = vpop.eup %1577 }
 0x1ba   :  { %v1837_v21 = vpop.eup %1579  ;;  %v761_v22 = vsel %vm697_vm2, %v1835_v20, 0.0 }
 0x1bb   :  { %762 = vadd.xlane.f32.xlu1 %v761_v22  ;;  %v764_v23 = vsel %vm697_vm2, %v1837_v21, 0.0 }
 0x1bc   :  { %765 = vadd.xlane.f32.xlu0 %v764_v23 }
 0x1bd   :  { %v1843_v24 = vpop.eup %1581 }
 0x1be   :  { %v767_v25 = vsel %vm697_vm2, %v1843_v24, 0.0 }
 0x1bf   :  { %768 = vadd.xlane.f32.xlu1 %v767_v25 }
 0x23c   :  { %v748_v28 = vpop.xlane.xlu0 %747 }
 0x23d   :  { %1583 = vrcp.f32 %v748_v28 }
 0x240   :  { %v751_v29 = vpop.xlane.xlu1 %750 }
 0x241   :  { %1585 = vrcp.f32 %v751_v29  ;;  %v754_v30 = vpop.xlane.xlu0 %753 }
 0x242   :  { %1587 = vrcp.f32 %v754_v30 }
 0x244   :  { %v757_v31 = vpop.xlane.xlu1 %756 }
 0x245   :  { %1589 = vrcp.f32 %v757_v31  ;;  %v760_v32 = vpop.xlane.xlu0 %759 }
 0x246   :  { %1591 = vrcp.f32 %v760_v32 }
 0x247   :  { %v1584_v33 = vpop.eup %1583 }
 0x248   :  { %v778_v34 = vmul.f32 %v1584_v33, %v1568_v5  ;;  %v763_v35 = vpop.xlane.xlu1 %762 }
 0x249   :  { %1593 = vrcp.f32 %v763_v35  ;;  %v766_v37 = vpop.xlane.xlu0 %765 }
 0x24a   :  { %1595 = vrcp.f32 %v766_v37  ;;  %1519 = vmatmul.mubr.msk.f32.vlgmr.msra.gmra.mrb[8].mxu0 %vm697_vm2, %v778_v34 }
 0x24b   :  { %v1586_v38 = vpop.eup %1585  ;;  %1527 = vmatpush3.msra.mxu0 %v82_v36  ;;  %1528 = vmatprep.mubr.msk.f32.mxu0 %vm1699_vm0, %v1698_v0 }
 0x24c   :  { %v1588_v39 = vpop.eup %1587  ;;  %v779_v40 = vmul.f32 %v1586_v38, %v1570_v11  ;;  %v769_v41 = vpop.xlane.xlu1 %768  ;;  %1536 = vmatprep.subr.mxu0 %v1698_v0 }
 0x24d   :  { %v780_v43 = vmul.f32 %v1588_v39, %v1572_v13  ;;  %1597 = vrcp.f32 %v769_v41 }
 0x24e   :  { %1524 = vmatmul.mubr.msk.f32.vlgmr.msra.gmra.mrb[8].mxu1 %vm697_vm2, %v779_v40 }
 0x24f   :  { %v1590_v45 = vpop.eup %1589  ;;  %1529 = vmatmul.mubr.msk.f32.vlgmr.msra.gmra.mrb[10].mxu0 %vm697_vm2, %v780_v43  ;;  %1532 = vmatpush3.msra.mxu1 %v83_v42 }
 0x250   :  { %v1592_v46 = vpop.eup %1591  ;;  %v781_v47 = vmul.f32 %v1590_v45, %v1574_v16  ;;  %1533 = vmatprep.mubr.msk.f32.mxu1 %vm1699_vm0, %v1698_v0  ;;  %1537 = vmatpush3.msra.mxu0 %v84_v44 }
 0x251   :  { %v782_v49 = vmul.f32 %v1592_v46, %v1576_v17  ;;  %1538 = vmatprep.mubr.msk.f32.mxu0 %vm1699_vm0, %v1698_v0  ;;  %1541 = vmatprep.subr.mxu1 %v1698_v0 }
 0x252   :  { %1534 = vmatmul.mubr.msk.f32.vlgmr.msra.gmra.mrb[10].mxu1 %vm697_vm2, %v781_v47  ;;  %1546 = vmatprep.subr.mxu0 %v1698_v0 }
 0x253   :  { %v1594_v51 = vpop.eup %1593  ;;  %1539 = vmatmul.mubr.msk.f32.vlgmr.msra.gmra.mrb[12].mxu0 %vm697_vm2, %v782_v49  ;;  %1542 = vmatpush3.msra.mxu1 %v85_v48 }
 0x254   :  { %v1596_v52 = vpop.eup %1595  ;;  %v783_v53 = vmul.f32 %v1594_v51, %v1835_v20  ;;  %1543 = vmatprep.mubr.msk.f32.mxu1 %vm1699_vm0, %v1698_v0  ;;  %1547 = vmatpush3.msra.mxu0 %v86_v50 }
 0x255   :  { %v784_v55 = vmul.f32 %v1596_v52, %v1837_v21  ;;  %1548 = vmatprep.mubr.msk.f32.mxu0 %vm1699_vm0, %v1698_v0  ;;  %1551 = vmatprep.subr.mxu1 %v1698_v0 }
 0x256   :  { %1544 = vmatmul.mubr.msk.f32.vlgmr.msra.gmra.mrb[12].mxu1 %vm697_vm2, %v783_v53 }
 0x257   :  { %v1598_v56 = vpop.eup %1597  ;;  %1549 = vmatmul.mubr.msk.f32.vlgmr.msra.gmra.mrb[14].mxu0 %vm697_vm2, %v784_v55  ;;  %1552 = vmatpush3.msra.mxu1 %v87_v54 }
 0x258   :  { %v785_v57 = vmul.f32 %v1598_v56, %v1843_v24  ;;  %1553 = vmatprep.mubr.msk.f32.mxu1 %vm1699_vm0, %v1698_v0 }
 0x25a   :  { %1554 = vmatmul.mubr.msk.f32.vlgmr.msra.gmra.mrb[14].mxu1 %vm697_vm2, %v785_v57 }
 0x31d   :  { %v855_v58 = vpop.f32.mrb[8].mxu0 }
 0x31e   :  { %v1520_v59 = vpop.f32.mrb[9].mxu0 }
 0x321   :  { %v928_v60 = vpop.f32.mrb[8].mxu1 }
 0x322   :  { %v1001_v61 = vpop.f32.mrb[10].mxu0  ;;  %v1525_v62 = vpop.f32.mrb[9].mxu1  ;;  %1371 = vrot.lane.b32.xlu0 %v928_v60, %s1700_s2 }
 0x323   :  { %1375 = vrot.lane.b32.xlu1 %v1001_v61, %s1701_s21  ;;  %v1530_v63 = vpop.f32.mrb[11].mxu0 }
 0x325   :  { %v1074_v1 = vpop.f32.mrb[10].mxu1 }
 0x326   :  { %v1147_v2 = vpop.f32.mrb[12].mxu0  ;;  %v1535_v3 = vpop.f32.mrb[11].mxu1  ;;  %1379 = vrot.lane.b32.xlu0 %v1074_v1, %s1702_s22 }
 0x327   :  { %v1540_v4 = vpop.f32.mrb[13].mxu0 }
 0x329   :  { %v1220_v5 = vpop.f32.mrb[12].mxu1 }
 0x32a   :  { %v1293_v0 = vpop.f32.mrb[14].mxu0  ;;  %v1545_v6 = vpop.f32.mrb[13].mxu1  ;;  %1383 = vrot.lane.b32.xlu1 %v1220_v5, %s1700_s2 }
 0x32b   :  { %v1550_v7 = vpop.f32.mrb[15].mxu0 }
 0x32d   :  { %v1366_v8 = vpop.f32.mrb[14].mxu1 }
 0x32e   :  { %v1555_v9 = vpop.f32.mrb[15].mxu1  ;;  %1387 = vrot.lane.b32.xlu1 %v1293_v0, %s1701_s21 }
 0x332   :  { %1391 = vrot.lane.b32.xlu1 %v1366_v8, %s1702_s22 }
 0x394   :  { %v1372_v10 = vpop.permute.xlu0 %1371 }
 0x395   :  { %v1394_v11 = vsel %vm88_vm1, %v855_v58, %v1372_v10  ;;  %v1376_v12 = vpop.permute.xlu1 %1375 }
 0x396   :  { %v1396_v13 = vsel %vm1395_vm3, %v1394_v11, %v1376_v12 }
 0x398   :  { %v1380_v14 = vpop.permute.xlu0 %1379 }
 0x399   :  { %v1398_v15 = vsel %vm1397_vm4, %v1396_v13, %v1380_v14 }
 0x39a   :  { %1402 = vst [vmem:[#allocation8] sm:$0xff] %v1398_v15 }
 0x39c   :  { %v1384_v16 = vpop.permute.xlu1 %1383 }
 0x39d   :  { %v1399_v18 = vsel %vm88_vm1, %v1147_v2, %v1384_v16 }
 0x3a0   :  { %v1388_v17 = vpop.permute.xlu1 %1387 }
 0x3a1   :  { %v1400_v19 = vsel %vm1395_vm3, %v1399_v18, %v1388_v17 }
 0x3a4   :  { %v1392_v20 = vpop.permute.xlu1 %1391 }
 0x3a5   :  { %v1401_v21 = vsel %vm1397_vm4, %v1400_v19, %v1392_v20 }
 0x3a6   :  { %1403 = vst [vmem:[#allocation8 + $0x8] sm:$0xff] %v1401_v21 }
 0x3a7   :  { %1676 = shalt.err (!%p1673_p0)
}
 0x3a8   :  { %s1677_s28 = scalar_lea.hbm %s1893_s3, 256 }
 0x3a9   :  { %p1678_p1 = scmp.ne.s32.totalorder %s1893_s3, %s1677_s28  ;;  %p1681_p2 = scmp.lt.u32.totalorder %s1677_s28, %s1893_s3 }
 0x3ab   :  { %p1683_p3 = pnand %p1681_p2, %p1678_p1 }
 0x3ad   :  { %1686 = shalt.err (!%p1683_p3)
}
 0x3ae   :  { %1413 = dma.vmem_to_hbm [thread:$0]  %s1411_s24, 256, %s1893_s3, [#allocation4]  }
 0x3af   :  { %1691 = dma.done.wait [#allocation4], 256  }
 0x3b0   :  { %1692 = vsyncadd [#allocation4], 4294967040 }
 0x3b1   :  { %1417 = vsyncpa [#allocation3], 1 }
 0x3b2   :  { %1418 = vsyncpa [#allocation6], 1 }
 0x3b3   :  { %1419 = vsyncpa [#allocation4], 1 }

</bundles_post_ra>
